<compile_context>
chip_gen: v6e
topology: v6e:2x2x1
jax: 0.10.0
libtpu: 0.0.40
codegen_flags: <defaults>
</compile_context>

<pallas_src>
import jax
import jax.numpy as jnp
from jax.experimental import pallas as pl
from jax.experimental.pallas import tpu as pltpu

LN_EPS = 1e-5  # PyTorch nn.LayerNorm default


def _cln_kernel(x_ref, gb_ref, ln_ref, out_ref):
    """One batch-tile of conditional LayerNorm (pure VPU/XLU streaming).

    x_ref/out_ref: (TB, R, L)  one (R, L) plane per batch element
    gb_ref:        (TB, 2, L)  row 0 = gamma, row 1 = beta (per batch element)
    ln_ref:        (2, R, L)   row 0 = LayerNorm weight, row 1 = LayerNorm bias
    """
    x = x_ref[...].astype(jnp.float32)                        # (TB, R, L)
    inv_n = 1.0 / float(x.shape[1] * x.shape[2])

    # Two-pass statistics (mean, then centered sum of squares): numerically
    # closer to nn.LayerNorm than the single-pass E[x^2]-E[x]^2 shortcut.
    mean = jnp.sum(x, axis=(1, 2), keepdims=True) * inv_n     # (TB, 1, 1)
    xc = x - mean
    var = jnp.sum(xc * xc, axis=(1, 2), keepdims=True) * inv_n
    xn = xc * jax.lax.rsqrt(var + LN_EPS)                     # normalized

    ln = ln_ref[...].astype(jnp.float32)                      # (2, R, L)
    lw = ln[0][None]                                          # (1, R, L)
    lb = ln[1][None]
    gb = gb_ref[...].astype(jnp.float32)                      # (TB, 2, L)
    g = gb[:, 0:1, :]                                         # (TB, 1, L)
    bt = gb[:, 1:2, :]

    # out = (xn * ln_w + ln_b) * gamma + beta   (same op order as the module)
    out_ref[...] = ((xn * lw + lb) * g + bt).astype(out_ref.dtype)


def _vmem_budgets():
    """Generation-aware (tile-pick budget, vmem_limit_bytes)."""
    try:
        cap = int(pltpu.get_tpu_info().vmem_capacity_bytes)
    except Exception:  # query unavailable -> conservative (v7x-class) defaults
        cap = 64 * 1024 * 1024
    if cap <= 64 * 1024 * 1024:
        # v7x-class: 64 MiB per TensorCore — leave headroom.
        return 22 * 1024 * 1024, 48 * 1024 * 1024
    # v5e / v6e: 128 MiB physical (v5e's default scoped limit is only 16 MiB,
    # so the explicit vmem_limit_bytes matters most there).
    return 56 * 1024 * 1024, 96 * 1024 * 1024


def _padded_plane_bytes(rows, lanes, itemsize):
    """VMEM footprint of one (rows, lanes) plane after (8, 128) tile padding."""
    return (-(-rows // 8) * 8) * (-(-lanes // 128) * 128) * itemsize


def _pick_tb(B, R, L, x_itemsize, out_itemsize, budget):
    """Largest batch tile under the VMEM budget, with >= 2 grid steps for B >= 2."""
    per_b = (2 * _padded_plane_bytes(R, L, x_itemsize)       # double-buffered x tile
             + 2 * _padded_plane_bytes(R, L, out_itemsize)   # double-buffered out tile
             + 2 * _padded_plane_bytes(R, L, 4))             # ~2 f32 temps in flight
    tb = max(1, min(B, budget // max(per_b, 1)))
    if B >= 2:
        # Guarantee >= 2 grid steps so ("parallel",) can shard across both v7x
        # TensorCores; costs one ~0.35us extra pipeline step on v5e/v6e.
        tb = min(tb, (B + 1) // 2)
    if tb > 8:
        tb -= tb % 8   # sublane-aligned batch tiles
    # TODO(synk): if per_b > budget even at tb=1 (huge S*E planes), add an
    # inner plane-tile grid axis with resident per-batch stats scratch
    # (two-pass) instead of one giant VMEM block.
    return max(tb, 1)


def conditional_layer_norm_2d(x, conditions, wg, wb, ln_w, ln_b):
    """Forward pass of ConditionalLayerNorm2d.

    x: (B, S, E), conditions: (B, C), wg/wb: (C, E) (transposed nn.Linear
    weights, gamma = cond @ wg), ln_w/ln_b: (S, E).
    Output dtype follows x; pass bf16 x / params to halve HBM traffic —
    statistics are always computed in f32 in-kernel.
    """
    B, S, E = x.shape
    F = S * E

    # --- hoisted conditioning: one fused (B,C)@(C,2E) MXU matmul in XLA ---
    w_cat = jnp.concatenate(
        [wg.astype(jnp.float32), wb.astype(jnp.float32)], axis=1)      # (C, 2E)
    gb = jnp.dot(conditions.astype(jnp.float32), w_cat,
                 preferred_element_type=jnp.float32).reshape(B, 2, E)  # (B, 2, E)

    # --- choose a lane-dense plane layout for the kernel ---
    if E % 128 != 0 and 128 % E == 0 and F % 128 == 0:
        # Repack (S, E) -> (F//128, 128): unmasked full-lane stores. Because E
        # divides 128, gamma/beta only need tiling to 128 lanes (tiny,
        # wrapper-side); x / ln reshapes are free row-major bitcasts.
        R, L = F // 128, 128
        x_k = x.reshape(B, R, L)
        gb_k = jnp.tile(gb, (1, 1, 128 // E))                           # (B, 2, 128)
        ln_k = jnp.stack([ln_w.reshape(R, L), ln_b.reshape(R, L)], axis=0)
    else:
        # E % 128 == 0 (production case) is already lane-dense as-is.
        # TODO(synk): other E (e.g. 96) fall back to masked stores here.
        R, L = S, E
        x_k = x
        gb_k = gb
        ln_k = jnp.stack([ln_w, ln_b], axis=0)                          # (2, S, E)

    budget, vmem_limit = _vmem_budgets()
    tb = _pick_tb(B, R, L, x.dtype.itemsize, x.dtype.itemsize, budget)
    grid = (pl.cdiv(B, tb),)   # non-divisor tb is safe: stats are per batch row

    out = pl.pallas_call(
        _cln_kernel,
        out_shape=jax.ShapeDtypeStruct((B, R, L), x.dtype),
        grid_spec=pltpu.PrefetchScalarGridSpec(
            num_scalar_prefetch=0,
            grid=grid,
            in_specs=[
                pl.BlockSpec((tb, R, L), lambda b: (b, 0, 0)),    # x
                pl.BlockSpec((tb, 2, L), lambda b: (b, 0, 0)),    # gamma/beta
                pl.BlockSpec((2, R, L), lambda b: (0, 0, 0)),     # ln params (grid-invariant)
            ],
            out_specs=pl.BlockSpec((tb, R, L), lambda b: (b, 0, 0)),
        ),
        compiler_params=pltpu.CompilerParams(
            dimension_semantics=("parallel",),
            vmem_limit_bytes=vmem_limit,
        ),
    )(x_k, gb_k, ln_k)
    return out.reshape(B, S, E)


def reference(x, conditions, wg, wb, ln_w, ln_b):
    x32 = x.astype(jnp.float32)
    mean = jnp.mean(x32, axis=(1, 2), keepdims=True)
    var = jnp.mean((x32 - mean) ** 2, axis=(1, 2), keepdims=True)
    xn = (x32 - mean) * jax.lax.rsqrt(var + LN_EPS)
    out = xn * ln_w.astype(jnp.float32) + ln_b.astype(jnp.float32)
    gamma = conditions.astype(jnp.float32) @ wg.astype(jnp.float32)  # (B, E)
    beta = conditions.astype(jnp.float32) @ wb.astype(jnp.float32)
    return out * gamma[:, None, :] + beta[:, None, :]


if __name__ == "__main__":
    # Small shapes consistent with the module's forward:
    B, S, E, C = 2, 8, 32, 16  # batch, seq_len, emb_size, conditions_dim

    key = jax.random.PRNGKey(0)
    kx, kc, kg, kb, kw, kbias = jax.random.split(key, 6)

    x = jax.random.normal(kx, (B, S, E), dtype=jnp.float32)
    conditions = jax.random.normal(kc, (B, C), dtype=jnp.float32)

    # nn.Linear(C, E, bias=False): weight (E, C) -> stored transposed as (C, E).
    bound = 1.0 / (C ** 0.5)
    wg = jax.random.uniform(kg, (C, E), minval=-bound, maxval=bound, dtype=jnp.float32)
    wb = jax.random.uniform(kb, (C, E), minval=-bound, maxval=bound, dtype=jnp.float32)
    # nn.LayerNorm([S, E]) init is ones/zeros; random values here exercise the
    # affine path. Kept in f32 to match the PyTorch module (bf16 is a
    # documented option to halve param traffic).
    ln_w = 1.0 + 0.1 * jax.random.normal(kw, (S, E), dtype=jnp.float32)
    ln_b = 0.1 * jax.random.normal(kbias, (S, E), dtype=jnp.float32)

    fn = jax.jit(conditional_layer_norm_2d)
    out = jax.block_until_ready(fn(x, conditions, wg, wb, ln_w, ln_b))

    ref = reference(x, conditions, wg, wb, ln_w, ln_b)
    assert out.shape == (B, S, E)
    assert jnp.allclose(out, ref, atol=1e-4, rtol=1e-4), "mismatch vs pure-JAX reference"

    print("KERNEL_OK")
</pallas_src>

<mosaic_0001>
module attributes {stable_mosaic.version = 11 : i64} {
  func.func @_cln_kernel(%arg0: i32, %arg1: memref<1x2x128xf32, #tpu.memory_space<vmem>>, %arg2: memref<1x2x128xf32, #tpu.memory_space<vmem>>, %arg3: memref<2x2x128xf32, #tpu.memory_space<vmem>>, %arg4: memref<1x2x128xf32, #tpu.memory_space<vmem>>) attributes {dimension_semantics = [#tpu.dimension_semantics<parallel>], iteration_bounds = array<i64: 2>, scalar_prefetch = 0 : i64, scratch_operands = 0 : i64, tpu.core_type = #tpu.core_type<tc>, window_params = [{transform_indices = @transform_0, window_bounds = array<i64: 1, 2, 128>}, {transform_indices = @transform_1, window_bounds = array<i64: 1, 2, 128>}, {pipeline_mode = #tpu.pipeline_mode<synchronous>, transform_indices = @transform_2, window_bounds = array<i64: 2, 2, 128>}, {transform_indices = @transform_3, window_bounds = array<i64: 1, 2, 128>}]} {
    %c0 = arith.constant 0 : index
    %c0_0 = arith.constant 0 : index
    %c0_1 = arith.constant 0 : index
    %0 = vector.load %arg1[%c0, %c0_0, %c0_1] : memref<1x2x128xf32, #tpu.memory_space<vmem>>, vector<1x2x128xf32>
    %cst = arith.constant dense<0.000000e+00> : vector<1xf32>
    %1 = vector.multi_reduction <add>, %0, %cst [1, 2] : vector<1x2x128xf32> to vector<1xf32>
    %2 = vector.shape_cast %1 : vector<1xf32> to vector<1x1x1xf32>
    %cst_2 = arith.constant 3.906250e-03 : f32
    %3 = vector.broadcast %cst_2 : f32 to vector<1x1x1xf32>
    %4 = arith.mulf %2, %3 : vector<1x1x1xf32>
    %5 = vector.broadcast %4 : vector<1x1x1xf32> to vector<1x2x128xf32>
    %6 = arith.subf %0, %5 : vector<1x2x128xf32>
    %7 = arith.mulf %6, %6 : vector<1x2x128xf32>
    %cst_3 = arith.constant dense<0.000000e+00> : vector<1xf32>
    %8 = vector.multi_reduction <add>, %7, %cst_3 [1, 2] : vector<1x2x128xf32> to vector<1xf32>
    %9 = vector.shape_cast %8 : vector<1xf32> to vector<1x1x1xf32>
    %cst_4 = arith.constant 3.906250e-03 : f32
    %10 = vector.broadcast %cst_4 : f32 to vector<1x1x1xf32>
    %11 = arith.mulf %9, %10 : vector<1x1x1xf32>
    %cst_5 = arith.constant 9.99999974E-6 : f32
    %12 = vector.broadcast %cst_5 : f32 to vector<1x1x1xf32>
    %13 = arith.addf %11, %12 : vector<1x1x1xf32>
    %14 = math.rsqrt %13 : vector<1x1x1xf32>
    %15 = vector.broadcast %14 : vector<1x1x1xf32> to vector<1x2x128xf32>
    %16 = arith.mulf %6, %15 : vector<1x2x128xf32>
    %c0_6 = arith.constant 0 : index
    %c0_7 = arith.constant 0 : index
    %c0_8 = arith.constant 0 : index
    %17 = vector.load %arg3[%c0_6, %c0_7, %c0_8] : memref<2x2x128xf32, #tpu.memory_space<vmem>>, vector<2x2x128xf32>
    %18 = vector.extract_strided_slice %17 {offsets = [0, 0, 0], sizes = [1, 2, 128], strides = [1, 1, 1]} : vector<2x2x128xf32> to vector<1x2x128xf32>
    %19 = vector.shape_cast %18 : vector<1x2x128xf32> to vector<2x128xf32>
    %20 = vector.shape_cast %19 : vector<2x128xf32> to vector<1x2x128xf32>
    %21 = vector.extract_strided_slice %17 {offsets = [1, 0, 0], sizes = [1, 2, 128], strides = [1, 1, 1]} : vector<2x2x128xf32> to vector<1x2x128xf32>
    %22 = vector.shape_cast %21 : vector<1x2x128xf32> to vector<2x128xf32>
    %23 = vector.shape_cast %22 : vector<2x128xf32> to vector<1x2x128xf32>
    %c0_9 = arith.constant 0 : index
    %c0_10 = arith.constant 0 : index
    %c0_11 = arith.constant 0 : index
    %24 = vector.load %arg2[%c0_9, %c0_10, %c0_11] : memref<1x2x128xf32, #tpu.memory_space<vmem>>, vector<1x2x128xf32>
    %25 = vector.extract_strided_slice %24 {offsets = [0, 0, 0], sizes = [1, 1, 128], strides = [1, 1, 1]} : vector<1x2x128xf32> to vector<1x1x128xf32>
    %26 = vector.extract_strided_slice %24 {offsets = [0, 1, 0], sizes = [1, 1, 128], strides = [1, 1, 1]} : vector<1x2x128xf32> to vector<1x1x128xf32>
    %27 = arith.mulf %16, %20 : vector<1x2x128xf32>
    %28 = arith.addf %27, %23 : vector<1x2x128xf32>
    %29 = vector.broadcast %25 : vector<1x1x128xf32> to vector<1x2x128xf32>
    %30 = arith.mulf %28, %29 : vector<1x2x128xf32>
    %31 = vector.broadcast %26 : vector<1x1x128xf32> to vector<1x2x128xf32>
    %32 = arith.addf %30, %31 : vector<1x2x128xf32>
    %c0_12 = arith.constant 0 : index
    %c0_13 = arith.constant 0 : index
    %c0_14 = arith.constant 0 : index
    %33 = vector.load %arg4[%c0_12, %c0_13, %c0_14] : memref<1x2x128xf32, #tpu.memory_space<vmem>>, vector<1x2x128xf32>
    tpu.vector_store %arg4[%c0_12, %c0_13, %c0_14], %32 {strides = array<i32>} : memref<1x2x128xf32, #tpu.memory_space<vmem>>, vector<1x2x128xf32>,
    return
  }
  func.func @transform_0(%arg0: i32) -> (i32, i32, i32) {
    %c0_i32 = arith.constant 0 : i32
    %c0_i32_0 = arith.constant 0 : i32
    %c0_i32_1 = arith.constant 0 : i32
    return %arg0, %c0_i32, %c0_i32_0 : i32, i32, i32
  }
  func.func @transform_1(%arg0: i32) -> (i32, i32, i32) {
    %c0_i32 = arith.constant 0 : i32
    %c0_i32_0 = arith.constant 0 : i32
    %c0_i32_1 = arith.constant 0 : i32
    return %arg0, %c0_i32, %c0_i32_0 : i32, i32, i32
  }
  func.func @transform_2(%arg0: i32) -> (i32, i32, i32) {
    %c0_i32 = arith.constant 0 : i32
    %c0_i32_0 = arith.constant 0 : i32
    %c0_i32_1 = arith.constant 0 : i32
    %c0_i32_2 = arith.constant 0 : i32
    return %c0_i32, %c0_i32_0, %c0_i32_1 : i32, i32, i32
  }
  func.func @transform_3(%arg0: i32) -> (i32, i32, i32) {
    %c0_i32 = arith.constant 0 : i32
    %c0_i32_0 = arith.constant 0 : i32
    %c0_i32_1 = arith.constant 0 : i32
    return %arg0, %c0_i32, %c0_i32_0 : i32, i32, i32
  }
}

</mosaic_0001>

<bundles_post_ra>
// kernel: tile.7
= control target key start
LH: loop header
LB: loop body
LE: loop exit
PB: predicated region body
PF: predicated region fallthrough
CT: control target
= control target key end

     0   :  { %vm22_vm0 = vcmask 261120   ;;  %s74_s14 = smov 32   ;;  %s75_s15 = smov 64   ;;  %vm30_vm1 = vcmask 1048320   ;;  %vm38_vm2 = vcmask 785920   ;;  %vm46_vm3 = vcmask 523520   ;;  %s104_s0 = inlined_call_operand.vmem [shape: f32[2,2,4,32], index: 0, kind: input, shape index: {}]   ;;  %s105_s1 = inlined_call_operand.vmem [shape: f32[2,2,128], index: 1, kind: output, shape index: {}]  }
   0x1   :  { %v66_v0 = vld [vmem:[%s104_s0 + $0xc] sm:$0xf]  ;;  %v67_v1 = vld [vmem:[%s104_s0 + $0x8] sm:$0xf]  ;;  %v68_v2 = vld [vmem:[%s104_s0 + $0x4] sm:$0xf] }
   0x2   :  { %9 = vst [vmem:[#allocation1 + $0x18] sm:$0xf] %v66_v0  ;;  %14 = vst [vmem:[#allocation1 + $0x10] sm:$0xf] %v67_v1  ;;  %v19_v3 = vld [vmem:[%s104_s0] sm:$0xf] }
   0x3   :  { %18 = vst [vmem:[#allocation1 + $0x8] sm:$0xf] %v68_v2  ;;  %20 = vst [vmem:[#allocation1] sm:$0xf] %v19_v3  ;;  %s73_s0 = smov 96  }
   0xa   :  { %v27_v4 = vld [vmem:[#allocation1 + $0x3] ss:$8 sm:$0xf]   ;;  %v43_v5 = vld [vmem:[#allocation1 + $0x1] ss:$8 sm:$0xf]  }
   0xb   :  { %28 = vrot.lane.b32.xlu0 %v27_v4, %s73_s0  ;;  %v21_v6 = vld [vmem:[#allocation1] ss:$8 sm:$0xf]   ;;  %v35_v7 = vld [vmem:[#allocation1 + $0x2] ss:$8 sm:$0xf]   ;;  %44 = vrot.lane.b32.xlu1 %v43_v5, %s74_s14 }
   0xc   :  { %23 = vst.msk [vmem:[#allocation0] sm:$0x3] %vm22_vm0, %v21_v6   ;;  %25 = vst.msk [vmem:[#allocation0 + $0x6] sm:$0xc] %vm22_vm0, %v21_v6  }
   0xf   :  { %36 = vrot.lane.b32.xlu0 %v35_v7, %s75_s15 }
  0x7d   :  { %v29_v8 = vpop.permute.xlu0 %28   ;;  %v45_v9 = vpop.permute.xlu1 %44  }
  0x7e   :  { %31 = vst.msk [vmem:[#allocation0] sm:$0x3] %vm30_vm1, %v29_v8   ;;  %33 = vst.msk [vmem:[#allocation0 + $0x6] sm:$0xc] %vm30_vm1, %v29_v8  }
  0x81   :  { %v37_v10 = vpop.permute.xlu0 %36  }
  0x82   :  { %39 = vst.msk [vmem:[#allocation0] sm:$0x3] %vm38_vm2, %v37_v10   ;;  %41 = vst.msk [vmem:[#allocation0 + $0x6] sm:$0xc] %vm38_vm2, %v37_v10  }
  0x83   :  { %47 = vst.msk [vmem:[#allocation0] sm:$0x3] %vm46_vm3, %v45_v9   ;;  %49 = vst.msk [vmem:[#allocation0 + $0x6] sm:$0xc] %vm46_vm3, %v45_v9  }
  0x8a   :  { %v54_v11 = vld [vmem:[#allocation0] sm:$0x3]  ;;  %v59_v12 = vld [vmem:[#allocation0 + $0x8] sm:$0x3] }
  0x8b   :  { %57 = vst [vmem:[%s105_s1] sm:$0x3] %v54_v11  ;;  %69 = vst [vmem:[%s105_s1 + $0x2] sm:$0x3] %v59_v12 }

// kernel: conditional_layer_norm_2d.1
= control target key start
LH: loop header
LB: loop body
LE: loop exit
PB: predicated region body
PF: predicated region fallthrough
CT: control target
= control target key end

     0   :  { %s339_s12 = smov 0   ;;  %s370_s0 = inlined_call_operand.vmem [shape: f32[2,2,128], index: 0, kind: input, shape index: {}]   ;;  %s371_s1 = inlined_call_operand.vmem [shape: f32[2,2,128], index: 1, kind: input, shape index: {}]   ;;  %s372_s2 = inlined_call_operand.vmem [shape: f32[2,2,128], index: 2, kind: input, shape index: {}]   ;;  %s373_s3 = inlined_call_operand.vmem [shape: f32[2,2,128], index: 3, kind: output, shape index: {}]  }
   0x1 LB: > { %s291_s13 = sadd.s32 4294967295, %s317_s12   ;;  %p295_p0 = scmp.ge.s32.totalorder %s317_s12, 1  ;;  %s317_s12 = sphi %s339_s12, %s13_s12  }
   0x2   : > { %p145_p1 = scmp.lt.s32.totalorder %s317_s12, 3 }
   0x4   : > { %p146_p2 = pnand %p295_p0, %p145_p1 }
   0x5   : > { %p171_p3 = scmp.lt.s32.totalorder (!%p146_p2), %s291_s13, 1 }
   0x6   : > { %149 = sbr.rel (%p146_p2) target bundleno = 352 (0x160), region = 32 }
   0xb   : > { %s375_s13 = smov (!%p171_p3, %s291_s13), 1  ;;  %vm184_vm0 = vcmask 1041408   ;;  %v215_v22 = vlaneseq  ;;  %v210_v27 = vld [vmem:[%s372_s2] sm:$0x3]  ;;  %v211_v30 = vld [vmem:[%s372_s2 + $0x2] sm:$0x3] }
   0xc   : > { %s347_s14 = sshll.u32 %s375_s13, 1 }
   0xd   : > { %s174_s17 = scalar_lea.vmem %s370_s0, %s347_s14  ;;  %v216_v23 = vshrl.u32 %v215_v22, 7  ;;  %s178_s20 = scalar_lea.vmem %s371_s1, %s347_s14 }
   0xe   : > { %v183_v0 = vld [vmem:[%s174_s17] sm:$0x3]  ;;  %s182_s27 = scalar_lea.vmem %s373_s3, %s347_s14 }
   0xf   : > { %v185_v1 = vsel %vm184_vm0, %v183_v0, 0.0  ;;  %v217_v24 = vsub.s32 0, %v216_v23  ;;  %v212_v26 = vld [vmem:[%s178_s20] sm:$0x3]  ;;  %v222_v28 = vsub.s32 1, %v216_v23 }
  0x10   : > { %186 = vadd.xlane.f32.xlu0 %v185_v1 }
  0x11   : > { %v218_v31 = vrot.slane %v212_v26, %v217_v24  ;;  %v223_v33 = vrot.slane %v212_v26, %v222_v28 }
  0x99   : > { %v187_v2 = vpop.xlane.xlu0 %186 }
  0x9a   : > { %v188_v3 = vrot.slane %v187_v2, 4 }
  0x9c   : > { %v189_v4 = vadd.f32 %v188_v3, %v187_v2 }
  0x9e   : > { %v190_v5 = vrot.slane %v189_v4, 2 }
  0xa0   : > { %v191_v6 = vadd.f32 %v190_v5, %v189_v4 }
  0xa2   : > { %v192_v7 = vrot.slane %v191_v6, 1 }
  0xa4   : > { %v193_v8 = vadd.f32 %v192_v7, %v191_v6 }
  0xa6   : > { %v194_v9 = vmul.f32 0.00390625, %v193_v8 }
  0xa8   : > { %v195_v10 = vsub.f32 %v183_v0, %v194_v9 }
  0xaa   : > { %v196_v11 = vmul.f32 %v195_v10, %v195_v10 }
  0xac   : > { %v197_v12 = vsel %vm184_vm0, %v196_v11, 0.0 }
  0xad   : > { %198 = vadd.xlane.f32.xlu0 %v197_v12 }
 0x136   : > { %v199_v13 = vpop.xlane.xlu0 %198 }
 0x137   : > { %v200_v14 = vrot.slane %v199_v13, 4 }
 0x139   : > { %v201_v15 = vadd.f32 %v200_v14, %v199_v13 }
 0x13b   : > { %v202_v16 = vrot.slane %v201_v15, 2 }
 0x13d   : > { %v203_v17 = vadd.f32 %v202_v16, %v201_v15 }
 0x13f   : > { %v204_v18 = vrot.slane %v203_v17, 1 }
 0x141   : > { %v205_v19 = vadd.f32 %v204_v18, %v203_v17 }
 0x143   : > { %v206_v20 = vmul.f32 0.00390625, %v205_v19 }
 0x145   : > { %v207_v21 = vadd.f32 1e-05, %v206_v20 }
 0x147   : > { %309 = vrsqrt.f32 %v207_v21 }
 0x154   : > { %v310_v25 = vpop.eup %309 }
 0x155   : > { %v209_v29 = vmul.f32 %v310_v25, %v195_v10 }
 0x157   : > { %v213_v32 = vmul.f32 %v210_v27, %v209_v29 }
 0x159   : > { %v214_v34 = vadd.f32 %v213_v32, %v211_v30 }
 0x15b   : > { %v219_v35 = vmul.f32 %v218_v31, %v214_v34 }
 0x15d   : > { %v224_v36 = vadd.f32 %v223_v33, %v219_v35 }
 0x15f   : > { %225 = vst [vmem:[%s182_s27] sm:$0x3] %v224_v36 }
 0x160 PF: > { %s13_s12 = sadd.s32 1, %s317_s12  }
 0x161   : > { %p10_p4 = scmp.ge.s32.totalorder %s13_s12, 4  }
 0x163   :  { %12 = sbr.rel (!%p10_p4) target bundleno = 1 (0x1), region = 65 }

</bundles_post_ra>
